<compile_context>
chip_gen: v7x
topology: tpu7x:2x2x1
jax: 0.10.0
libtpu: 0.0.40
codegen_flags: <defaults>
</compile_context>

<pallas_src>
import functools
import numpy as np
import jax
import jax.numpy as jnp
from jax.experimental import pallas as pl
from jax.experimental.pallas import tpu as pltpu

LANE = 128  # vreg lane width (last dim)


def _pad_to(n, m):
    return ((n + m - 1) // m) * m


def _choose_row_tile(m_rows):
    """Row-block size: <=2 blocks for small batches (feeds both v7x TCs,
    minimal per-step overhead on single-TC v5e/v6e); 512 rows for large M."""
    m8 = _pad_to(max(int(m_rows), 8), 8)
    if m8 <= 1024:
        nblk = 2 if m8 >= 16 else 1
        return _pad_to((m8 + nblk - 1) // nblk, 8)
    return 512


# ------------------------------ Pallas kernel ------------------------------ #

def mlp_kernel(x_ref, *refs, num_layers, compute_dtype):
    """Fused MLP: refs = (w0, b0, w1, b1, ..., w_{L-1}, b_{L-1}, o_ref).

    Weights are pre-transposed to (in, out), zero-padded to 128-lane multiples
    and (optionally) stored as bf16 in the wrapper, so each layer is a
    lane-dense  h @ W + b  with f32 accumulation.  Bias add and relu stay in
    f32 (VPU path).  Everything stays resident in VMEM/vregs between layers.
    """
    o_ref = refs[-1]
    wb = refs[:-1]
    h = x_ref[...]  # f32
    for i in range(num_layers):
        w = wb[2 * i][...]          # already compute_dtype (f32 or bf16)
        b = wb[2 * i + 1][...]      # f32
        h = jnp.dot(h.astype(compute_dtype), w,
                    preferred_element_type=jnp.float32) + b
        if i < num_layers - 1:
            h = jnp.maximum(h, 0.0)  # relu; Identity norm; no dropout (eval)
    o_ref[...] = h.astype(o_ref.dtype)


# --------------------------- one-time param prep ---------------------------- #

def prepare_mlp_params(weights, biases, in_channels, compute_dtype=jnp.float32):
    """Transpose to (in, out), zero-pad to 128-lane multiples, cast weights to
    compute_dtype.  Done once, outside the forward path."""
    num_layers = len(weights)
    dims = tuple([int(in_channels)] + [int(w.shape[0]) for w in weights])
    pdims = tuple(_pad_to(d, LANE) for d in dims)
    packed = []
    for l in range(num_layers):
        din, dout = dims[l], dims[l + 1]
        pin, pout = pdims[l], pdims[l + 1]
        w_t = jnp.zeros((pin, pout), jnp.float32).at[:din, :dout].set(weights[l].T)
        b_p = jnp.zeros((1, pout), jnp.float32).at[0, :dout].set(biases[l])
        packed += [w_t.astype(compute_dtype), b_p]  # bias stays f32
    return tuple(packed), dims, pdims


# ------------------------------ jitted forward ------------------------------ #

@functools.partial(jax.jit,
                   static_argnames=("dims", "pdims", "compute_dtype", "row_tile"))
def _mlp_forward(x, packed, dims, pdims, compute_dtype, row_tile):
    M, d_in = x.shape
    num_layers = len(dims) - 1

    # Feature-pad x to the lane width (fused under this jit with the launch).
    # No row padding: the ragged last grid block is handled by Pallas masking.
    if d_in != pdims[0]:
        x_p = jnp.zeros((M, pdims[0]), jnp.float32).at[:, :d_in].set(x)
    else:
        x_p = x.astype(jnp.float32)

    grid = (pl.cdiv(M, row_tile),)

    in_specs = [pl.BlockSpec((row_tile, pdims[0]), lambda i: (i, 0))]
    for l in range(num_layers):
        pin, pout = pdims[l], pdims[l + 1]
        # Full-array blocks, broadcast across the row grid (resident weights).
        in_specs += [pl.BlockSpec((pin, pout), lambda i: (0, 0)),
                     pl.BlockSpec((1, pout), lambda i: (0, 0))]

    w_itemsize = np.dtype(compute_dtype).itemsize
    mac = sum(pdims[l] * pdims[l + 1] for l in range(num_layers))
    cost = pl.CostEstimate(
        flops=2 * int(M) * mac,
        transcendentals=0,
        bytes_accessed=(int(M) * pdims[0] * 4                    # x
                        + mac * w_itemsize                        # weights
                        + sum(pdims[l + 1] for l in range(num_layers)) * 4  # biases
                        + int(M) * pdims[-1] * 4))                # out

    kernel = functools.partial(mlp_kernel, num_layers=num_layers,
                               compute_dtype=compute_dtype)
    out_p = pl.pallas_call(
        kernel,
        out_shape=jax.ShapeDtypeStruct((M, pdims[-1]), jnp.float32),
        grid=grid,
        in_specs=in_specs,
        out_specs=pl.BlockSpec((row_tile, pdims[-1]), lambda i: (i, 0)),
        compiler_params=pltpu.CompilerParams(
            dimension_semantics=("parallel",),
            # Per-block VMEM use here is ~1 MiB; 32 MiB budget is safe on
            # v5e/v6e (128 MiB physical) and v7x (64 MiB physical).
            vmem_limit_bytes=32 * 1024 * 1024),
        cost_estimate=cost,
    )(x_p, *packed)
    return out_p[:, :dims[-1]]


def make_pallas_mlp(weights, biases, in_channels, *,
                    compute_dtype=jnp.float32, row_tile=None):
    """Prepare params once; return a forward(x) closure."""
    packed, dims, pdims = prepare_mlp_params(weights, biases, in_channels,
                                             compute_dtype)
    def forward(x):
        rt = row_tile if row_tile is not None else _choose_row_tile(x.shape[0])
        return _mlp_forward(x, packed, dims, pdims, compute_dtype, rt)
    return forward


# ---------------------------- parameter init -------------------------------- #

def init_mlp_params(key, in_channels, hidden_channels, out_channels, num_layers):
    """Matches torch nn.Linear default init (uniform +-1/sqrt(fan_in))."""
    if num_layers == 1:
        layer_dims = [(in_channels, out_channels)]
    else:
        layer_dims = ([(in_channels, hidden_channels)]
                      + [(hidden_channels, hidden_channels)] * (num_layers - 2)
                      + [(hidden_channels, out_channels)])
    weights, biases = [], []
    for (din, dout) in layer_dims:
        key, kw, kb = jax.random.split(key, 3)
        bound = 1.0 / np.sqrt(din)
        weights.append(jax.random.uniform(kw, (dout, din), jnp.float32, -bound, bound))
        biases.append(jax.random.uniform(kb, (dout,), jnp.float32, -bound, bound))
    return weights, biases


# ------------------------- pure-JAX reference ------------------------------- #

def ref_mlp(x, weights, biases):
    h = x
    L = len(weights)
    for i in range(L):
        h = h @ weights[i].T + biases[i]
        if i < L - 1:
            h = jax.nn.relu(h)
    return h


# ----------------------------------- main ----------------------------------- #

if __name__ == "__main__":
    # Small shapes consistent with the module: 200 samples,
    # in_channels=16, hidden_channels=32, out_channels=32, num_layers=3.
    n_samples, in_channels, hidden_channels, out_channels = 200, 16, 32, 32
    num_layers = 3

    key = jax.random.PRNGKey(0)
    k_x, k_p = jax.random.split(key)
    x = jax.random.normal(k_x, (n_samples, in_channels), jnp.float32)
    weights, biases = init_mlp_params(k_p, in_channels, hidden_channels,
                                      out_channels, num_layers)
    ref = ref_mlp(x, weights, biases)

    # f32 MXU path (bit-closest to the torch reference).
    mlp_f32 = make_pallas_mlp(weights, biases, in_channels,
                              compute_dtype=jnp.float32)
    out_f32 = jax.block_until_ready(mlp_f32(x))
    assert out_f32.shape == (n_samples, out_channels)
    assert np.allclose(np.asarray(out_f32), np.asarray(ref),
                       rtol=1e-4, atol=1e-4), "f32 path mismatch vs reference"

    # bf16-operand MXU fast path (canonical on v5e/v6e/v7x; f32 accumulate,
    # f32 bias add + relu). Looser tolerance vs the f32 reference is expected.
    mlp_bf16 = make_pallas_mlp(weights, biases, in_channels,
                               compute_dtype=jnp.bfloat16)
    out_bf16 = jax.block_until_ready(mlp_bf16(x))
    assert out_bf16.shape == (n_samples, out_channels)
    assert np.allclose(np.asarray(out_bf16), np.asarray(ref),
                       rtol=3e-2, atol=3e-2), "bf16 path mismatch vs reference"

    print("KERNEL_OK")
</pallas_src>

<mosaic_0001>
module attributes {stable_mosaic.version = 11 : i64} {
  func.func @mlp_kernel(%arg0: i32, %arg1: memref<104x128xf32, #tpu.memory_space<vmem>>, %arg2: memref<128x128xf32, #tpu.memory_space<vmem>>, %arg3: memref<1x128xf32, #tpu.memory_space<vmem>>, %arg4: memref<128x128xf32, #tpu.memory_space<vmem>>, %arg5: memref<1x128xf32, #tpu.memory_space<vmem>>, %arg6: memref<128x128xf32, #tpu.memory_space<vmem>>, %arg7: memref<1x128xf32, #tpu.memory_space<vmem>>, %arg8: memref<104x128xf32, #tpu.memory_space<vmem>>) attributes {dimension_semantics = [#tpu.dimension_semantics<parallel>], iteration_bounds = array<i64: 2>, scalar_prefetch = 0 : i64, scratch_operands = 0 : i64, tpu.core_type = #tpu.core_type<tc>, window_params = [{transform_indices = @transform_0, window_bounds = array<i64: 104, 128>}, {pipeline_mode = #tpu.pipeline_mode<synchronous>, transform_indices = @transform_1, window_bounds = array<i64: 128, 128>}, {pipeline_mode = #tpu.pipeline_mode<synchronous>, transform_indices = @transform_2, window_bounds = array<i64: 1, 128>}, {pipeline_mode = #tpu.pipeline_mode<synchronous>, transform_indices = @transform_3, window_bounds = array<i64: 128, 128>}, {pipeline_mode = #tpu.pipeline_mode<synchronous>, transform_indices = @transform_4, window_bounds = array<i64: 1, 128>}, {pipeline_mode = #tpu.pipeline_mode<synchronous>, transform_indices = @transform_5, window_bounds = array<i64: 128, 128>}, {pipeline_mode = #tpu.pipeline_mode<synchronous>, transform_indices = @transform_6, window_bounds = array<i64: 1, 128>}, {transform_indices = @transform_7, window_bounds = array<i64: 104, 128>}]} {
    %c0 = arith.constant 0 : index
    %c0_0 = arith.constant 0 : index
    %0 = vector.load %arg1[%c0, %c0_0] : memref<104x128xf32, #tpu.memory_space<vmem>>, vector<104x128xf32>
    %c0_1 = arith.constant 0 : index
    %c0_2 = arith.constant 0 : index
    %1 = vector.load %arg2[%c0_1, %c0_2] : memref<128x128xf32, #tpu.memory_space<vmem>>, vector<128x128xf32>
    %c0_3 = arith.constant 0 : index
    %c0_4 = arith.constant 0 : index
    %2 = vector.load %arg3[%c0_3, %c0_4] : memref<1x128xf32, #tpu.memory_space<vmem>>, vector<1x128xf32>
    %cst = arith.constant dense<0.000000e+00> : vector<104x128xf32>
    %3 = tpu.matmul %0, %1, %cst {dimension_numbers = #tpu.dot_dimension_numbers<[1], [0], [0], [1], [0, 0, 1, 1], [], []>} : vector<104x128xf32>, vector<128x128xf32>, vector<104x128xf32> -> vector<104x128xf32>
    %4 = vector.broadcast %2 : vector<1x128xf32> to vector<104x128xf32>
    %5 = arith.addf %3, %4 : vector<104x128xf32>
    %cst_5 = arith.constant 0.000000e+00 : f32
    %6 = vector.broadcast %cst_5 : f32 to vector<104x128xf32>
    %7 = arith.maximumf %5, %6 : vector<104x128xf32>
    %c0_6 = arith.constant 0 : index
    %c0_7 = arith.constant 0 : index
    %8 = vector.load %arg4[%c0_6, %c0_7] : memref<128x128xf32, #tpu.memory_space<vmem>>, vector<128x128xf32>
    %c0_8 = arith.constant 0 : index
    %c0_9 = arith.constant 0 : index
    %9 = vector.load %arg5[%c0_8, %c0_9] : memref<1x128xf32, #tpu.memory_space<vmem>>, vector<1x128xf32>
    %cst_10 = arith.constant dense<0.000000e+00> : vector<104x128xf32>
    %10 = tpu.matmul %7, %8, %cst_10 {dimension_numbers = #tpu.dot_dimension_numbers<[1], [0], [0], [1], [0, 0, 1, 1], [], []>} : vector<104x128xf32>, vector<128x128xf32>, vector<104x128xf32> -> vector<104x128xf32>
    %11 = vector.broadcast %9 : vector<1x128xf32> to vector<104x128xf32>
    %12 = arith.addf %10, %11 : vector<104x128xf32>
    %cst_11 = arith.constant 0.000000e+00 : f32
    %13 = vector.broadcast %cst_11 : f32 to vector<104x128xf32>
    %14 = arith.maximumf %12, %13 : vector<104x128xf32>
    %c0_12 = arith.constant 0 : index
    %c0_13 = arith.constant 0 : index
    %15 = vector.load %arg6[%c0_12, %c0_13] : memref<128x128xf32, #tpu.memory_space<vmem>>, vector<128x128xf32>
    %c0_14 = arith.constant 0 : index
    %c0_15 = arith.constant 0 : index
    %16 = vector.load %arg7[%c0_14, %c0_15] : memref<1x128xf32, #tpu.memory_space<vmem>>, vector<1x128xf32>
    %cst_16 = arith.constant dense<0.000000e+00> : vector<104x128xf32>
    %17 = tpu.matmul %14, %15, %cst_16 {dimension_numbers = #tpu.dot_dimension_numbers<[1], [0], [0], [1], [0, 0, 1, 1], [], []>} : vector<104x128xf32>, vector<128x128xf32>, vector<104x128xf32> -> vector<104x128xf32>
    %18 = vector.broadcast %16 : vector<1x128xf32> to vector<104x128xf32>
    %19 = arith.addf %17, %18 : vector<104x128xf32>
    %c0_17 = arith.constant 0 : index
    %c0_18 = arith.constant 0 : index
    %20 = vector.load %arg8[%c0_17, %c0_18] : memref<104x128xf32, #tpu.memory_space<vmem>>, vector<104x128xf32>
    tpu.vector_store %arg8[%c0_17, %c0_18], %19 {strides = array<i32>} : memref<104x128xf32, #tpu.memory_space<vmem>>, vector<104x128xf32>,
    return
  }
  func.func @transform_0(%arg0: i32) -> (i32, i32) {
    %c0_i32 = arith.constant 0 : i32
    %c0_i32_0 = arith.constant 0 : i32
    return %arg0, %c0_i32 : i32, i32
  }
  func.func @transform_1(%arg0: i32) -> (i32, i32) {
    %c0_i32 = arith.constant 0 : i32
    %c0_i32_0 = arith.constant 0 : i32
    %c0_i32_1 = arith.constant 0 : i32
    return %c0_i32, %c0_i32_0 : i32, i32
  }
  func.func @transform_2(%arg0: i32) -> (i32, i32) {
    %c0_i32 = arith.constant 0 : i32
    %c0_i32_0 = arith.constant 0 : i32
    %c0_i32_1 = arith.constant 0 : i32
    return %c0_i32, %c0_i32_0 : i32, i32
  }
  func.func @transform_3(%arg0: i32) -> (i32, i32) {
    %c0_i32 = arith.constant 0 : i32
    %c0_i32_0 = arith.constant 0 : i32
    %c0_i32_1 = arith.constant 0 : i32
    return %c0_i32, %c0_i32_0 : i32, i32
  }
  func.func @transform_4(%arg0: i32) -> (i32, i32) {
    %c0_i32 = arith.constant 0 : i32
    %c0_i32_0 = arith.constant 0 : i32
    %c0_i32_1 = arith.constant 0 : i32
    return %c0_i32, %c0_i32_0 : i32, i32
  }
  func.func @transform_5(%arg0: i32) -> (i32, i32) {
    %c0_i32 = arith.constant 0 : i32
    %c0_i32_0 = arith.constant 0 : i32
    %c0_i32_1 = arith.constant 0 : i32
    return %c0_i32, %c0_i32_0 : i32, i32
  }
  func.func @transform_6(%arg0: i32) -> (i32, i32) {
    %c0_i32 = arith.constant 0 : i32
    %c0_i32_0 = arith.constant 0 : i32
    %c0_i32_1 = arith.constant 0 : i32
    return %c0_i32, %c0_i32_0 : i32, i32
  }
  func.func @transform_7(%arg0: i32) -> (i32, i32) {
    %c0_i32 = arith.constant 0 : i32
    %c0_i32_0 = arith.constant 0 : i32
    return %arg0, %c0_i32 : i32, i32
  }
}

</mosaic_0001>

<bundles_post_ra>
// kernel: _mlp_forward.1
= control target key start
LH: loop header
LB: loop body
LE: loop exit
PB: predicated region body
PF: predicated region fallthrough
CT: control target
= control target key end

     0   :  { %s1713_s24 = smov 0   ;;  %s1715_s25 = smov 0   ;;  %s2163_s0 = inlined_call_operand.vmem [shape: f32[200,128], index: 0, kind: input, shape index: {}]   ;;  %s2164_s1 = inlined_call_operand.vmem [shape: f32[128,128], index: 1, kind: input, shape index: {}]   ;;  %s2165_s2 = inlined_call_operand.vmem [shape: f32[1,128], index: 2, kind: input, shape index: {}]   ;;  %s2166_s3 = inlined_call_operand.vmem [shape: f32[128,128], index: 3, kind: input, shape index: {}]   ;;  %s2167_s4 = inlined_call_operand.vmem [shape: f32[1,128], index: 4, kind: input, shape index: {}]   ;;  %s2168_s5 = inlined_call_operand.vmem [shape: f32[128,128], index: 5, kind: input, shape index: {}]   ;;  %s2169_s6 = inlined_call_operand.vmem [shape: f32[1,128], index: 6, kind: input, shape index: {}]   ;;  %s2170_s7 = inlined_call_operand.vmem [shape: f32[200,128], index: 7, kind: output, shape index: {}]  }
   0x1   :  { %s1717_s26 = smov 0  }
   0x2 LB: > { %s1726_s27 = sadd.s32 4294967295, %s1636_s26   ;;  %s1728_s28 = sadd.s32 1, %s1636_s26   ;;  %s1636_s26 = sphi %s1717_s26, %s2177_s26   ;;  %s1632_s25 = sphi %s1715_s25, %s2176_s25   ;;  %s1628_s24 = sphi %s1713_s24, %s2175_s24  }
   0x3   : > { %s173_s29 = ssub.s32 %s1636_s26, %s1728_s28  ;;  %s176_s30 = sadd.s32 1, %s1632_s25 }
   0x4   : > { %p174_p0 = scmp.eq.s32.totalorder %s173_s29, 0  ;;  %p186_p1 = scmp.ne.s32.totalorder %s1632_s25, %s1628_s24 }
   0x5   : > { %p187_p2 = scmp.eq.s32.totalorder %s1726_s27, 1  ;;  %p1079_p3 = scmp.ge.s32.totalorder %s1636_s26, 1 }
   0x6   : > { %s1736_s8 = scalar_select %p174_p0, %s1632_s25, %s176_s30  }
   0x7   : > { %p1738_p4 = por %p187_p2, %p186_p1  ;;  %p246_p5 = scmp.lt.s32.totalorder %s1636_s26, 3 }
   0x9   : > { %p247_p6 = pnand %p1079_p3, %p246_p5 }
   0xa   : > { %v313_v0 = vld [vmem:[%s2164_s1] sm:$0xff] (!%p247_p6)  ;;  %v314_v1 = vld [vmem:[%s2164_s1 + $0x8] sm:$0xff] (!%p247_p6)  ;;  %v315_v2 = vld [vmem:[%s2164_s1 + $0x10] sm:$0xff] (!%p247_p6)  ;;  %v1670_v3 = vmov (!%p247_p6), 0.0|0.0   ;;  %vm1671_vm0 = vmmov (!%p247_p6), 0   ;;  %v1672_v6 = vmov (!%p247_p6), 0.0  }
   0xb   : > { %250 = sbr.rel (%p247_p6) target bundleno = 800 (0x320), region = 48  ;;  %1397 = vmatprep.subr.bf16.mxu0 (!%p247_p6), %v1670_v3  ;;  %v1398_v4 = vpack.c.bf16 (!%p247_p6), %v314_v1, %v313_v0  ;;  %v316_v5 = vld [vmem:[%s2164_s1 + $0x18] sm:$0xff] (!%p247_p6)  ;;  %1216 = vmatprep.mubr.msk.f32.mxu0 (!%p247_p6), %vm1671_vm0, %v1672_v6  ;;  %v317_v8 = vld [vmem:[%s2164_s1 + $0x20] sm:$0xff] (!%p247_p6)  ;;  %v318_v9 = vld [vmem:[%s2164_s1 + $0x28] sm:$0xff] (!%p247_p6) }
   0xc   : > { %1421 = vmatprep.subr.bf16.mxu1 (!%p247_p6), %v1670_v3  ;;  %1287 = vmatprep.mubr.msk.f32.mxu1 (!%p247_p6), %vm1671_vm0, %v1672_v6  ;;  %v1401_v7 = vpack.c.bf16 (!%p247_p6), %v316_v5, %v315_v2  ;;  %v479_v10 = vld [vmem:[%s2166_s3] sm:$0xff] (!%p247_p6)  ;;  %v480_v11 = vld [vmem:[%s2166_s3 + $0x8] sm:$0xff] (!%p247_p6)  ;;  %v481_v13 = vld [vmem:[%s2166_s3 + $0x10] sm:$0xff] (!%p247_p6)  ;;  %v1404_v15 = vpack.c.bf16 (!%p247_p6), %v318_v9, %v317_v8  ;;  %s1801_s29 = smul.u32 (!%p247_p6), 13, %s1726_s27 }
   0xd   : > { %1399 = vmatpush3.bf16.msra.mxu0 (!%p247_p6), %v1398_v4  ;;  %v1422_v12 = vpack.c.bf16 (!%p247_p6), %v480_v11, %v479_v10  ;;  %v482_v14 = vld [vmem:[%s2166_s3 + $0x18] sm:$0xff] (!%p247_p6)  ;;  %v319_v16 = vld [vmem:[%s2164_s1 + $0x30] sm:$0xff] (!%p247_p6)  ;;  %v483_v19 = vld [vmem:[%s2166_s3 + $0x20] sm:$0xff] (!%p247_p6) }
   0xe   : > { %1400 = vmatprep.subr.bf16.mxu0 (!%p247_p6), %v1670_v3  ;;  %v320_v17 = vld [vmem:[%s2164_s1 + $0x38] sm:$0xff] (!%p247_p6)  ;;  %v1425_v18 = vpack.c.bf16 (!%p247_p6), %v482_v14, %v481_v13  ;;  %v484_v20 = vld [vmem:[%s2166_s3 + $0x28] sm:$0xff] (!%p247_p6)  ;;  %v321_v22 = vld [vmem:[%s2164_s1 + $0x40] sm:$0xff] (!%p247_p6)  ;;  %p286_p7 = scmp.lt.s32.totalorder (!%p247_p6), %s1801_s29, 24 }
   0xf   : > { %1423 = vmatpush3.bf16.msra.mxu1 (!%p247_p6), %v1422_v12  ;;  %v1407_v21 = vpack.c.bf16 (!%p247_p6), %v320_v17, %v319_v16  ;;  %v322_v23 = vld [vmem:[%s2164_s1 + $0x48] sm:$0xff] (!%p247_p6)  ;;  %v1428_v24 = vpack.c.bf16 (!%p247_p6), %v484_v20, %v483_v19  ;;  %v485_v25 = vld [vmem:[%s2166_s3 + $0x30] sm:$0xff] (!%p247_p6)  ;;  %v486_v26 = vld [vmem:[%s2166_s3 + $0x38] sm:$0xff] (!%p247_p6) }
  0x10   : > { %1424 = vmatprep.subr.bf16.mxu1 (!%p247_p6), %v1670_v3  ;;  %v1410_v27 = vpack.c.bf16 (!%p247_p6), %v322_v23, %v321_v22  ;;  %v323_v28 = vld [vmem:[%s2164_s1 + $0x50] sm:$0xff] (!%p247_p6)  ;;  %v324_v29 = vld [vmem:[%s2164_s1 + $0x58] sm:$0xff] (!%p247_p6)  ;;  %v1431_v30 = vpack.c.bf16 (!%p247_p6), %v486_v26, %v485_v25  ;;  %v487_v31 = vld [vmem:[%s2166_s3 + $0x40] sm:$0xff] (!%p247_p6) }
  0x11   : > { %1402 = vmatpush3.bf16.msra.mxu0 (!%p247_p6), %v1401_v7  ;;  %v488_v32 = vld [vmem:[%s2166_s3 + $0x48] sm:$0xff] (!%p247_p6)  ;;  %v1413_v33 = vpack.c.bf16 (!%p247_p6), %v324_v29, %v323_v28  ;;  %v325_v34 = vld [vmem:[%s2164_s1 + $0x60] sm:$0xff] (!%p247_p6)  ;;  %v489_v37 = vld [vmem:[%s2166_s3 + $0x50] sm:$0xff] (!%p247_p6) }
  0x12   : > { %1403 = vmatprep.subr.bf16.mxu0 %v1670_v3  ;;  %v326_v35 = vld [vmem:[%s2164_s1 + $0x68] sm:$0xff]  ;;  %v1434_v36 = vpack.c.bf16 %v488_v32, %v487_v31  ;;  %s287_s30 = scalar_select %p286_p7, %s1801_s29, 24  ;;  %v490_v38 = vld [vmem:[%s2166_s3 + $0x58] sm:$0xff]  ;;  %v327_v40 = vld [vmem:[%s2164_s1 + $0x70] sm:$0xff] }
  0x13   : > { %1426 = vmatpush3.bf16.msra.mxu1 %v1425_v18  ;;  %v1416_v39 = vpack.c.bf16 %v326_v35, %v325_v34  ;;  %v328_v41 = vld [vmem:[%s2164_s1 + $0x78] sm:$0xff]  ;;  %v1437_v42 = vpack.c.bf16 %v490_v38, %v489_v37  ;;  %v491_v43 = vld [vmem:[%s2166_s3 + $0x60] sm:$0xff]  ;;  %v492_v44 = vld [vmem:[%s2166_s3 + $0x68] sm:$0xff]  ;;  %s1096_s23 = smul.u32 (%p1738_p4), 104, %s1726_s27 }
  0x14   : > { %1427 = vmatprep.subr.bf16.mxu1 %v1670_v3  ;;  %s1080_s18 = sshll.u32 %s287_s30, 3  ;;  %v1419_v45 = vpack.c.bf16 %v328_v41, %v327_v40  ;;  %v1440_v46 = vpack.c.bf16 %v492_v44, %v491_v43  ;;  %v493_v60 = vld [vmem:[%s2166_s3 + $0x70] sm:$0xff]  ;;  %v494_v61 = vld [vmem:[%s2166_s3 + $0x78] sm:$0xff]  ;;  %v645_v63 = vld [vmem:[%s2168_s5] sm:$0xff] }
  0x15   : > { %1405 = vmatpush3.bf16.msra.mxu0 %v1404_v15  ;;  %s1858_s10 = scalar_lea.vmem %s2163_s0, %s1080_s18  ;;  %v1443_v62 = vpack.c.bf16 %v494_v61, %v493_v60  ;;  %v646_v0 = vld [vmem:[%s2168_s5 + $0x8] sm:$0xff]  ;;  %v647_v1 = vld [vmem:[%s2168_s5 + $0x10] sm:$0xff]  ;;  %v648_v4 = vld [vmem:[%s2168_s5 + $0x18] sm:$0xff]  ;;  %s278_s18 = sand.u32 1, %s1628_s24  }
  0x16   : > { %1406 = vmatprep.subr.bf16.mxu0 %v1670_v3  ;;  %v300_v47 = vld [vmem:[%s1858_s10] sm:$0xff]  ;;  %v301_v48 = vld [vmem:[%s1858_s10 + $0x8] sm:$0xff]  ;;  %v302_v49 = vld [vmem:[%s1858_s10 + $0x10] sm:$0xff]  ;;  %v1446_v2 = vpack.c.bf16 %v646_v0, %v645_v63  ;;  %v1449_v5 = vpack.c.bf16 %v648_v4, %v647_v1  ;;  %s1485_s19 = smul.u32 104, %s278_s18  ;;  %s819_s24 = ssub.s32 (%p1738_p4), 25, %s1801_s29 }
  0x17   : > { %1429 = vmatpush3.bf16.msra.mxu1 %v1428_v24  ;;  %v303_v50 = vld [vmem:[%s1858_s10 + $0x18] sm:$0xff]  ;;  %v304_v51 = vld [vmem:[%s1858_s10 + $0x20] sm:$0xff]  ;;  %v305_v52 = vld [vmem:[%s1858_s10 + $0x28] sm:$0xff]  ;;  %p820_p8 = scmp.lt.s32.totalorder (%p1738_p4), %s819_s24, 13  ;;  %s2081_s30 = scalar_lea.vmem (%p1738_p4), %s2170_s7, %s1096_s23  }
  0x18   : > { %1430 = vmatprep.subr.bf16.mxu1 %v1670_v3  ;;  %v306_v53 = vld [vmem:[%s1858_s10 + $0x30] sm:$0xff]  ;;  %v307_v54 = vld [vmem:[%s1858_s10 + $0x38] sm:$0xff]  ;;  %v308_v55 = vld [vmem:[%s1858_s10 + $0x40] sm:$0xff]  ;;  %s2059_s22 = scalar_lea.vmem [#allocation2], %s1485_s19  }
  0x19   : > { %1408 = vmatpush3.bf16.msra.mxu0 %v1407_v21  ;;  %v309_v56 = vld [vmem:[%s1858_s10 + $0x48] sm:$0xff]  ;;  %v310_v57 = vld [vmem:[%s1858_s10 + $0x50] sm:$0xff]  ;;  %v311_v58 = vld [vmem:[%s1858_s10 + $0x58] sm:$0xff] }
  0x1a   : > { %1409 = vmatprep.subr.bf16.mxu0 %v1670_v3  ;;  %v312_v59 = vld [vmem:[%s1858_s10 + $0x60] sm:$0xff]  ;;  %v650_v8 = vld [vmem:[%s2168_s5 + $0x28] sm:$0xff]  ;;  %v651_v10 = vld [vmem:[%s2168_s5 + $0x30] sm:$0xff] }
  0x1b   : > { %1432 = vmatpush3.bf16.msra.mxu1 %v1431_v30  ;;  %v649_v7 = vld [vmem:[%s2168_s5 + $0x20] sm:$0xff]  ;;  %v652_v11 = vld [vmem:[%s2168_s5 + $0x38] sm:$0xff]  ;;  %v654_v14 = vld [vmem:[%s2168_s5 + $0x48] sm:$0xff] }
  0x1c   : > { %1433 = vmatprep.subr.bf16.mxu1 %v1670_v3  ;;  %v1452_v9 = vpack.c.bf16 %v650_v8, %v649_v7  ;;  %v1455_v12 = vpack.c.bf16 %v652_v11, %v651_v10  ;;  %v653_v13 = vld [vmem:[%s2168_s5 + $0x40] sm:$0xff]  ;;  %v655_v16 = vld [vmem:[%s2168_s5 + $0x50] sm:$0xff]  ;;  %v656_v17 = vld [vmem:[%s2168_s5 + $0x58] sm:$0xff] }
  0x1d   : > { %1411 = vmatpush3.bf16.msra.mxu0 %v1410_v27  ;;  %v1458_v15 = vpack.c.bf16 %v654_v14, %v653_v13  ;;  %v1461_v18 = vpack.c.bf16 %v656_v17, %v655_v16  ;;  %v657_v19 = vld [vmem:[%s2168_s5 + $0x60] sm:$0xff]  ;;  %v658_v20 = vld [vmem:[%s2168_s5 + $0x68] sm:$0xff]  ;;  %v660_v13 = vld [vmem:[%s2168_s5 + $0x78] sm:$0xff] }
  0x1e   : > { %1412 = vmatprep.subr.bf16.mxu0 %v1670_v3  ;;  %v1464_v21 = vpack.c.bf16 %v658_v20, %v657_v19  ;;  %v1961_v22 = vld [vmem:[%s2165_s2] ss:$0 sm:$0xff] }
  0x1f   : > { %1435 = vmatpush3.bf16.msra.mxu1 %v1434_v36 }
  0x20   : > { %1436 = vmatprep.subr.bf16.mxu1 %v1670_v3 }
  0x21   : > { %1414 = vmatpush3.bf16.msra.mxu0 %v1413_v33 }
  0x22   : > { %1415 = vmatprep.subr.bf16.mxu0 %v1670_v3 }
  0x23   : > { %1438 = vmatpush3.bf16.msra.mxu1 %v1437_v42 }
  0x24   : > { %1439 = vmatprep.subr.bf16.mxu1 %v1670_v3 }
  0x25   : > { %1417 = vmatpush3.bf16.msra.mxu0 %v1416_v39 }
  0x26   : > { %1418 = vmatprep.subr.bf16.mxu0 %v1670_v3 }
  0x27   : > { %1441 = vmatpush3.bf16.msra.mxu1 %v1440_v46 }
  0x28   : > { %1442 = vmatprep.subr.bf16.mxu1 %v1670_v3 }
  0x29   : > { %1420 = vmatpush3.bf16.msra.mxu0 %v1419_v45 }
  0x2a   : > { %1445 = vmatprep.subr.bf16.mxu0 %v1670_v3 }
  0x2b   : > { %1444 = vmatpush3.bf16.msra.mxu1 %v1443_v62 }
  0x2c   : > { %1217 = vmatmul.mubr.f32.vlgmr.msra.gmra.mrb[0].mxu0 %v300_v47  ;;  %1469 = vmatprep.subr.bf16.mxu1 %v1670_v3 }
  0x2d   : > { %1219 = vmatprep.mubr.msk.f32.mxu0 %vm1671_vm0, %v1672_v6  ;;  %1447 = vmatpush3.bf16.msra.mxu0 %v1446_v2 }
  0x2e   : > { %1448 = vmatprep.subr.bf16.mxu0 %v1670_v3 }
  0x30   : > { %1220 = vmatmul.mubr.f32.gmra.mrb[2].mxu0 %v301_v48 }
  0x31   : > { %1222 = vmatprep.mubr.msk.f32.mxu0 %vm1671_vm0, %v1672_v6  ;;  %1450 = vmatpush3.bf16.msra.mxu0 %v1449_v5 }
  0x32   : > { %1451 = vmatprep.subr.bf16.mxu0 %v1670_v3 }
  0x34   : > { %1223 = vmatmul.mubr.f32.gmra.mrb[4].mxu0 %v302_v49 }
  0x35   : > { %1225 = vmatprep.mubr.msk.f32.mxu0 %vm1671_vm0, %v1672_v6  ;;  %1453 = vmatpush3.bf16.msra.mxu0 %v1452_v9 }
  0x36   : > { %1454 = vmatprep.subr.bf16.mxu0 %v1670_v3 }
  0x38   : > { %1226 = vmatmul.mubr.f32.gmra.mrb[6].mxu0 %v303_v50 }
  0x39   : > { %1228 = vmatprep.mubr.msk.f32.mxu0 %vm1671_vm0, %v1672_v6  ;;  %1456 = vmatpush3.bf16.msra.mxu0 %v1455_v12 }
  0x3a   : > { %1457 = vmatprep.subr.bf16.mxu0 %v1670_v3 }
  0x3c   : > { %1229 = vmatmul.mubr.f32.gmra.mrb[8].mxu0 %v304_v51 }
  0x3d   : > { %1231 = vmatprep.mubr.msk.f32.mxu0 %vm1671_vm0, %v1672_v6  ;;  %1459 = vmatpush3.bf16.msra.mxu0 %v1458_v15 }
  0x3e   : > { %1460 = vmatprep.subr.bf16.mxu0 %v1670_v3 }
  0x40   : > { %1232 = vmatmul.mubr.f32.gmra.mrb[10].mxu0 %v305_v52 }
  0x41   : > { %1234 = vmatprep.mubr.msk.f32.mxu0 %vm1671_vm0, %v1672_v6  ;;  %1462 = vmatpush3.bf16.msra.mxu0 %v1461_v18 }
  0x42   : > { %1463 = vmatprep.subr.bf16.mxu0 %v1670_v3 }
  0x44   : > { %1235 = vmatmul.mubr.f32.gmra.mrb[12].mxu0 %v306_v53 }
  0x45   : > { %1237 = vmatprep.mubr.msk.f32.mxu0 %vm1671_vm0, %v1672_v6  ;;  %1465 = vmatpush3.bf16.msra.mxu0 %v1464_v21 }
  0x46   : > { %1466 = vmatprep.subr.bf16.mxu0 %v1670_v3 }
  0x48   : > { %1238 = vmatmul.mubr.f32.gmra.mrb[14].mxu0 %v307_v54 }
  0x49   : > { %1240 = vmatprep.mubr.msk.f32.mxu0 %vm1671_vm0, %v1672_v6 }
  0x4c   : > { %1241 = vmatmul.mubr.f32.gmra.mrb[16].mxu0 %v308_v55 }
  0x4d   : > { %1243 = vmatprep.mubr.msk.f32.mxu0 %vm1671_vm0, %v1672_v6 }
  0x50   : > { %1244 = vmatmul.mubr.f32.gmra.mrb[18].mxu0 %v309_v56 }
  0x51   : > { %1246 = vmatprep.mubr.msk.f32.mxu0 %vm1671_vm0, %v1672_v6 }
  0x54   : > { %1247 = vmatmul.mubr.f32.gmra.mrb[20].mxu0 %v310_v57 }
  0x55   : > { %1249 = vmatprep.mubr.msk.f32.mxu0 %vm1671_vm0, %v1672_v6 }
  0x58   : > { %1250 = vmatmul.mubr.f32.gmra.mrb[22].mxu0 %v311_v58 }
  0x59   : > { %1252 = vmatprep.mubr.msk.f32.mxu0 %vm1671_vm0, %v1672_v6 }
  0x5c   : > { %1253 = vmatmul.mubr.f32.gmra.mrb[24].mxu0 %v312_v59 }
  0x5d   : > { %1358 = vmatprep.mubr.msk.f32.mxu0 %vm1671_vm0, %v1672_v6 }
  0xff   : > { %v402_v23 = vpop.f32.mrb[0].mxu0 }
 0x100   : > { %v403_v24 = vadd.f32 %v1961_v22, %v402_v23  ;;  %v1218_v25 = vpop.f32.mrb[1].mxu0 }
 0x102   : > { %v466_v26 = vmax.f32 %v403_v24, 0.0 }
 0x103   : > { %v407_v27 = vpop.f32.mrb[2].mxu0 }
 0x104   : > { %v408_v28 = vadd.f32 %v1961_v22, %v407_v27  ;;  %v1221_v29 = vpop.f32.mrb[3].mxu0  ;;  %1288 = vmatmul.mubr.f32.vlgmr.msra.gmra.mrb[0].mxu1 %v466_v26 }
 0x105   : > { %1290 = vmatprep.mubr.msk.f32.mxu1 %vm1671_vm0, %v1672_v6  ;;  %1477 = vmatpush3.bf16.msra.mxu1 %v1446_v2 }
 0x106   : > { %v467_v30 = vmax.f32 %v408_v28, 0.0  ;;  %1470 = vmatprep.subr.bf16.mxu1 %v1670_v3 }
 0x107   : > { %v412_v31 = vpop.f32.mrb[4].mxu0 }
 0x108   : > { %v413_v32 = vadd.f32 %v1961_v22, %v412_v31  ;;  %v1224_v33 = vpop.f32.mrb[5].mxu0  ;;  %1291 = vmatmul.mubr.f32.gmra.mrb[2].mxu1 %v467_v30 }
 0x109   : > { %1293 = vmatprep.mubr.msk.f32.mxu1 %vm1671_vm0, %v1672_v6  ;;  %1478 = vmatpush3.bf16.msra.mxu1 %v1449_v5 }
 0x10a   : > { %v468_v34 = vmax.f32 %v413_v32, 0.0  ;;  %1471 = vmatprep.subr.bf16.mxu1 %v1670_v3 }
 0x10b   : > { %v417_v35 = vpop.f32.mrb[6].mxu0 }
 0x10c   : > { %v418_v36 = vadd.f32 %v1961_v22, %v417_v35  ;;  %v1227_v37 = vpop.f32.mrb[7].mxu0  ;;  %1294 = vmatmul.mubr.f32.gmra.mrb[4].mxu1 %v468_v34 }
 0x10d   : > { %1296 = vmatprep.mubr.msk.f32.mxu1 %vm1671_vm0, %v1672_v6  ;;  %1479 = vmatpush3.bf16.msra.mxu1 %v1452_v9 }
 0x10e   : > { %v469_v38 = vmax.f32 %v418_v36, 0.0  ;;  %1472 = vmatprep.subr.bf16.mxu1 %v1670_v3 }
 0x10f   : > { %v422_v39 = vpop.f32.mrb[8].mxu0 }
 0x110   : > { %v423_v40 = vadd.f32 %v1961_v22, %v422_v39  ;;  %v1230_v41 = vpop.f32.mrb[9].mxu0  ;;  %1297 = vmatmul.mubr.f32.gmra.mrb[6].mxu1 %v469_v38 }
 0x111   : > { %1299 = vmatprep.mubr.msk.f32.mxu1 %vm1671_vm0, %v1672_v6  ;;  %1480 = vmatpush3.bf16.msra.mxu1 %v1455_v12  ;;  %v659_v12 = vld [vmem:[%s2168_s5 + $0x70] sm:$0xff] }
 0x112   : > { %v470_v42 = vmax.f32 %v423_v40, 0.0  ;;  %1473 = vmatprep.subr.bf16.mxu1 %v1670_v3  ;;  %v1467_v14 = vpack.c.bf16 %v660_v13, %v659_v12 }
 0x113   : > { %v427_v43 = vpop.f32.mrb[10].mxu0 }
 0x114   : > { %v428_v44 = vadd.f32 %v1961_v22, %v427_v43  ;;  %v1233_v45 = vpop.f32.mrb[11].mxu0  ;;  %1300 = vmatmul.mubr.f32.gmra.mrb[8].mxu1 %v470_v42  ;;  %1468 = vmatpush3.bf16.msra.mxu0 %v1467_v14 }
 0x115   : > { %1302 = vmatprep.mubr.msk.f32.mxu1 %vm1671_vm0, %v1672_v6  ;;  %1481 = vmatpush3.bf16.msra.mxu1 %v1458_v15  ;;  %v2018_v15 = vld [vmem:[%s2167_s4] ss:$0 sm:$0xff] }
 0x116   : > { %v471_v46 = vmax.f32 %v428_v44, 0.0  ;;  %1474 = vmatprep.subr.bf16.mxu1 %v1670_v3 }
 0x117   : > { %v432_v47 = vpop.f32.mrb[12].mxu0 }
 0x118   : > { %v433_v48 = vadd.f32 %v1961_v22, %v432_v47  ;;  %v1236_v49 = vpop.f32.mrb[13].mxu0  ;;  %1303 = vmatmul.mubr.f32.gmra.mrb[10].mxu1 %v471_v46 }
 0x119   : > { %1305 = vmatprep.mubr.msk.f32.mxu1 %vm1671_vm0, %v1672_v6  ;;  %1482 = vmatpush3.bf16.msra.mxu1 %v1461_v18 }
 0x11a   : > { %v472_v50 = vmax.f32 %v433_v48, 0.0  ;;  %1475 = vmatprep.subr.bf16.mxu1 %v1670_v3 }
 0x11b   : > { %v437_v51 = vpop.f32.mrb[14].mxu0 }
 0x11c   : > { %v438_v52 = vadd.f32 %v1961_v22, %v437_v51  ;;  %v1239_v53 = vpop.f32.mrb[15].mxu0  ;;  %1306 = vmatmul.mubr.f32.gmra.mrb[12].mxu1 %v472_v50 }
 0x11d   : > { %1308 = vmatprep.mubr.msk.f32.mxu1 %vm1671_vm0, %v1672_v6  ;;  %1483 = vmatpush3.bf16.msra.mxu1 %v1464_v21 }
 0x11e   : > { %v473_v54 = vmax.f32 %v438_v52, 0.0  ;;  %1476 = vmatprep.subr.bf16.mxu1 %v1670_v3 }
 0x11f   : > { %v442_v55 = vpop.f32.mrb[16].mxu0 }
 0x120   : > { %v443_v56 = vadd.f32 %v1961_v22, %v442_v55  ;;  %v1242_v57 = vpop.f32.mrb[17].mxu0  ;;  %1309 = vmatmul.mubr.f32.gmra.mrb[14].mxu1 %v473_v54 }
 0x121   : > { %1311 = vmatprep.mubr.msk.f32.mxu1 %vm1671_vm0, %v1672_v6  ;;  %1484 = vmatpush3.bf16.msra.mxu1 %v1467_v14 }
 0x122   : > { %v474_v58 = vmax.f32 %v443_v56, 0.0 }
 0x123   : > { %v447_v59 = vpop.f32.mrb[18].mxu0 }
 0x124   : > { %v448_v60 = vadd.f32 %v1961_v22, %v447_v59  ;;  %v1245_v61 = vpop.f32.mrb[19].mxu0  ;;  %1312 = vmatmul.mubr.f32.gmra.mrb[16].mxu1 %v474_v58 }
 0x125   : > { %1314 = vmatprep.mubr.msk.f32.mxu1 %vm1671_vm0, %v1672_v6 }
 0x126   : > { %v475_v62 = vmax.f32 %v448_v60, 0.0 }
 0x127   : > { %v452_v63 = vpop.f32.mrb[20].mxu0 }
 0x128   : > { %v453_v3 = vadd.f32 %v1961_v22, %v452_v63  ;;  %v1248_v0 = vpop.f32.mrb[21].mxu0  ;;  %1315 = vmatmul.mubr.f32.gmra.mrb[18].mxu1 %v475_v62 }
 0x129   : > { %1317 = vmatprep.mubr.msk.f32.mxu1 %vm1671_vm0, %v1672_v6 }
 0x12a   : > { %v476_v1 = vmax.f32 %v453_v3, 0.0 }
 0x12b   : > { %v457_v2 = vpop.f32.mrb[22].mxu0 }
 0x12c   : > { %v458_v4 = vadd.f32 %v1961_v22, %v457_v2  ;;  %v1251_v5 = vpop.f32.mrb[23].mxu0  ;;  %1318 = vmatmul.mubr.f32.gmra.mrb[20].mxu1 %v476_v1 }
 0x12d   : > { %1320 = vmatprep.mubr.msk.f32.mxu1 %vm1671_vm0, %v1672_v6 }
 0x12e   : > { %v477_v7 = vmax.f32 %v458_v4, 0.0  ;;  %v1083_v4 = vld [vmem:[%s2169_s6] ss:$0 sm:$0xff] }
 0x12f   : > { %v462_v8 = vpop.f32.mrb[24].mxu0 }
 0x130   : > { %v463_v9 = vadd.f32 %v1961_v22, %v462_v8  ;;  %v1254_v10 = vpop.f32.mrb[25].mxu0  ;;  %1321 = vmatmul.mubr.f32.gmra.mrb[22].mxu1 %v477_v7 }
 0x131   : > { %1323 = vmatprep.mubr.msk.f32.mxu1 %vm1671_vm0, %v1672_v6 }
 0x132   : > { %v478_v11 = vmax.f32 %v463_v9, 0.0 }
 0x134   : > { %1324 = vmatmul.mubr.f32.gmra.mrb[24].mxu1 %v478_v11 }
 0x135   : > { %1379 = vmatprep.mubr.msk.f32.mxu1 %vm1671_vm0, %v1672_v6 }
 0x1d7   : > { %v568_v16 = vpop.f32.mrb[0].mxu1 }
 0x1d8   : > { %v569_v17 = vadd.f32 %v2018_v15, %v568_v16  ;;  %v1289_v18 = vpop.f32.mrb[1].mxu1 }
 0x1da   : > { %v632_v19 = vmax.f32 %v569_v17, 0.0 }
 0x1db   : > { %v573_v20 = vpop.f32.mrb[2].mxu1 }
 0x1dc   : > { %v574_v21 = vadd.f32 %v2018_v15, %v573_v20  ;;  %v1292_v22 = vpop.f32.mrb[3].mxu1  ;;  %1359 = vmatmul.mubr.f32.vlgmr.msra.gmra.mrb[26].mxu0 %v632_v19 }
 0x1dd   : > { %1361 = vmatprep.mubr.msk.f32.mxu0 %vm1671_vm0, %v1672_v6 }
 0x1de   : > { %v633_v23 = vmax.f32 %v574_v21, 0.0 }
 0x1df   : > { %v578_v24 = vpop.f32.mrb[4].mxu1 }
 0x1e0   : > { %v579_v25 = vadd.f32 %v2018_v15, %v578_v24  ;;  %v1295_v26 = vpop.f32.mrb[5].mxu1  ;;  %1362 = vmatmul.mubr.f32.gmra.mrb[28].mxu0 %v633_v23 }
 0x1e1   : > { %1364 = vmatprep.mubr.msk.f32.mxu0 %vm1671_vm0, %v1672_v6 }
 0x1e2   : > { %v634_v27 = vmax.f32 %v579_v25, 0.0 }
 0x1e3   : > { %v583_v28 = vpop.f32.mrb[6].mxu1 }
 0x1e4   : > { %v584_v29 = vadd.f32 %v2018_v15, %v583_v28  ;;  %v1298_v30 = vpop.f32.mrb[7].mxu1  ;;  %1365 = vmatmul.mubr.f32.gmra.mrb[30].mxu0 %v634_v27 }
 0x1e5   : > { %1367 = vmatprep.mubr.msk.f32.mxu0 %vm1671_vm0, %v1672_v6 }
 0x1e6   : > { %v635_v31 = vmax.f32 %v584_v29, 0.0 }
 0x1e7   : > { %v588_v32 = vpop.f32.mrb[8].mxu1 }
 0x1e8   : > { %v589_v33 = vadd.f32 %v2018_v15, %v588_v32  ;;  %v1301_v34 = vpop.f32.mrb[9].mxu1  ;;  %1368 = vmatmul.mubr.f32.gmra.mrb[32].mxu0 %v635_v31 }
 0x1e9   : > { %1370 = vmatprep.mubr.msk.f32.mxu0 %vm1671_vm0, %v1672_v6 }
 0x1ea   : > { %v636_v35 = vmax.f32 %v589_v33, 0.0 }
 0x1eb   : > { %v593_v36 = vpop.f32.mrb[10].mxu1 }
 0x1ec   : > { %v594_v37 = vadd.f32 %v2018_v15, %v593_v36  ;;  %v1304_v38 = vpop.f32.mrb[11].mxu1  ;;  %1371 = vmatmul.mubr.f32.gmra.mrb[34].mxu0 %v636_v35 }
 0x1ed   : > { %1373 = vmatprep.mubr.msk.f32.mxu0 %vm1671_vm0, %v1672_v6 }
 0x1ee   : > { %v637_v39 = vmax.f32 %v594_v37, 0.0 }
 0x1ef   : > { %v598_v40 = vpop.f32.mrb[12].mxu1 }
 0x1f0   : > { %v599_v41 = vadd.f32 %v2018_v15, %v598_v40  ;;  %v1307_v42 = vpop.f32.mrb[13].mxu1  ;;  %1374 = vmatmul.mubr.f32.gmra.mrb[36].mxu0 %v637_v39 }
 0x1f1   : > { %1376 = vmatprep.mubr.msk.f32.mxu0 %vm1671_vm0, %v1672_v6 }
 0x1f2   : > { %v638_v43 = vmax.f32 %v599_v41, 0.0 }
 0x1f3   : > { %v603_v44 = vpop.f32.mrb[14].mxu1 }
 0x1f4   : > { %v604_v45 = vadd.f32 %v2018_v15, %v603_v44  ;;  %v1310_v46 = vpop.f32.mrb[15].mxu1  ;;  %1377 = vmatmul.mubr.f32.gmra.mrb[38].mxu0 %v638_v43 }
 0x1f6   : > { %v639_v47 = vmax.f32 %v604_v45, 0.0 }
 0x1f7   : > { %v608_v48 = vpop.f32.mrb[16].mxu1 }
 0x1f8   : > { %v609_v49 = vadd.f32 %v2018_v15, %v608_v48  ;;  %v1313_v50 = vpop.f32.mrb[17].mxu1  ;;  %1380 = vmatmul.mubr.f32.vlgmr.msra.gmra.mrb[26].mxu1 %v639_v47 }
 0x1f9   : > { %1382 = vmatprep.mubr.msk.f32.mxu1 %vm1671_vm0, %v1672_v6 }
 0x1fa   : > { %v640_v51 = vmax.f32 %v609_v49, 0.0 }
 0x1fb   : > { %v613_v52 = vpop.f32.mrb[18].mxu1 }
 0x1fc   : > { %v614_v53 = vadd.f32 %v2018_v15, %v613_v52  ;;  %v1316_v54 = vpop.f32.mrb[19].mxu1  ;;  %1383 = vmatmul.mubr.f32.gmra.mrb[28].mxu1 %v640_v51 }
 0x1fd   : > { %1385 = vmatprep.mubr.msk.f32.mxu1 %vm1671_vm0, %v1672_v6 }
 0x1fe   : > { %v641_v55 = vmax.f32 %v614_v53, 0.0 }
 0x1ff   : > { %v618_v56 = vpop.f32.mrb[20].mxu1 }
 0x200   : > { %v619_v57 = vadd.f32 %v2018_v15, %v618_v56  ;;  %v1319_v58 = vpop.f32.mrb[21].mxu1  ;;  %1386 = vmatmul.mubr.f32.gmra.mrb[30].mxu1 %v641_v55 }
 0x201   : > { %1388 = vmatprep.mubr.msk.f32.mxu1 %vm1671_vm0, %v1672_v6 }
 0x202   : > { %v642_v59 = vmax.f32 %v619_v57, 0.0 }
 0x203   : > { %v623_v60 = vpop.f32.mrb[22].mxu1 }
 0x204   : > { %v624_v61 = vadd.f32 %v2018_v15, %v623_v60  ;;  %v1322_v62 = vpop.f32.mrb[23].mxu1  ;;  %1389 = vmatmul.mubr.f32.gmra.mrb[32].mxu1 %v642_v59 }
 0x205   : > { %1391 = vmatprep.mubr.msk.f32.mxu1 %vm1671_vm0, %v1672_v6 }
 0x206   : > { %v643_v63 = vmax.f32 %v624_v61, 0.0 }
 0x207   : > { %v628_v3 = vpop.f32.mrb[24].mxu1 }
 0x208   : > { %v629_v0 = vadd.f32 %v2018_v15, %v628_v3  ;;  %v1325_v1 = vpop.f32.mrb[25].mxu1  ;;  %1392 = vmatmul.mubr.f32.gmra.mrb[34].mxu1 %v643_v63 }
 0x209   : > { %1394 = vmatprep.mubr.msk.f32.mxu1 %vm1671_vm0, %v1672_v6 }
 0x20a   : > { %v644_v2 = vmax.f32 %v629_v0, 0.0 }
 0x20c   : > { %1395 = vmatmul.mubr.f32.gmra.mrb[36].mxu1 %v644_v2 }
 0x2af   : > { %v734_v5 = vpop.f32.mrb[26].mxu0 }
 0x2b0   : > { %v735_v7 = vadd.f32 %v1083_v4, %v734_v5  ;;  %v1360_v8 = vpop.f32.mrb[27].mxu0 }
 0x2b2   : > { %798 = vst [vmem:[%s2059_s22] sm:$0xff] %v735_v7 }
 0x2b3   : > { %v739_v6 = vpop.f32.mrb[28].mxu0 }
 0x2b4   : > { %v740_v9 = vadd.f32 %v1083_v4, %v739_v6  ;;  %v1363_v10 = vpop.f32.mrb[29].mxu0 }
 0x2b6   : > { %799 = vst [vmem:[%s2059_s22 + $0x8] sm:$0xff] %v740_v9 }
 0x2b7   : > { %v744_v11 = vpop.f32.mrb[30].mxu0 }
 0x2b8   : > { %v745_v12 = vadd.f32 %v1083_v4, %v744_v11  ;;  %v1366_v13 = vpop.f32.mrb[31].mxu0 }
 0x2ba   : > { %800 = vst [vmem:[%s2059_s22 + $0x10] sm:$0xff] %v745_v12 }
 0x2bb   : > { %v749_v14 = vpop.f32.mrb[32].mxu0 }
 0x2bc   : > { %v750_v15 = vadd.f32 %v1083_v4, %v749_v14  ;;  %v1369_v16 = vpop.f32.mrb[33].mxu0 }
 0x2be   : > { %801 = vst [vmem:[%s2059_s22 + $0x18] sm:$0xff] %v750_v15 }
 0x2bf   : > { %v754_v17 = vpop.f32.mrb[34].mxu0 }
 0x2c0   : > { %v755_v18 = vadd.f32 %v1083_v4, %v754_v17  ;;  %v1372_v19 = vpop.f32.mrb[35].mxu0 }
 0x2c2   : > { %802 = vst [vmem:[%s2059_s22 + $0x20] sm:$0xff] %v755_v18 }
 0x2c3   : > { %v759_v20 = vpop.f32.mrb[36].mxu0 }
 0x2c4   : > { %v760_v21 = vadd.f32 %v1083_v4, %v759_v20  ;;  %v1375_v22 = vpop.f32.mrb[37].mxu0 }
 0x2c6   : > { %803 = vst [vmem:[%s2059_s22 + $0x28] sm:$0xff] %v760_v21 }
 0x2c7   : > { %v764_v23 = vpop.f32.mrb[38].mxu0 }
 0x2c8   : > { %v765_v24 = vadd.f32 %v1083_v4, %v764_v23  ;;  %v1378_v25 = vpop.f32.mrb[39].mxu0 }
 0x2ca   : > { %804 = vst [vmem:[%s2059_s22 + $0x30] sm:$0xff] %v765_v24 }
 0x2cb   : > { %v769_v26 = vpop.f32.mrb[26].mxu1 }
 0x2cc   : > { %v770_v27 = vadd.f32 %v1083_v4, %v769_v26  ;;  %v1381_v28 = vpop.f32.mrb[27].mxu1 }
 0x2ce   : > { %805 = vst [vmem:[%s2059_s22 + $0x38] sm:$0xff] %v770_v27 }
 0x2cf   : > { %v774_v29 = vpop.f32.mrb[28].mxu1 }
 0x2d0   : > { %v775_v30 = vadd.f32 %v1083_v4, %v774_v29  ;;  %v1384_v31 = vpop.f32.mrb[29].mxu1 }
 0x2d2   : > { %806 = vst [vmem:[%s2059_s22 + $0x40] sm:$0xff] %v775_v30 }
 0x2d3   : > { %v779_v32 = vpop.f32.mrb[30].mxu1 }
 0x2d4   : > { %v780_v33 = vadd.f32 %v1083_v4, %v779_v32  ;;  %v1387_v34 = vpop.f32.mrb[31].mxu1 }
 0x2d6   : > { %807 = vst [vmem:[%s2059_s22 + $0x48] sm:$0xff] %v780_v33 }
 0x2d7   : > { %v784_v35 = vpop.f32.mrb[32].mxu1 }
 0x2d8   : > { %v785_v36 = vadd.f32 %v1083_v4, %v784_v35  ;;  %v1390_v37 = vpop.f32.mrb[33].mxu1 }
 0x2da   : > { %808 = vst [vmem:[%s2059_s22 + $0x50] sm:$0xff] %v785_v36 }
 0x2db   : > { %v789_v38 = vpop.f32.mrb[34].mxu1 }
 0x2dc   : > { %v790_v39 = vadd.f32 %v1083_v4, %v789_v38  ;;  %v1393_v40 = vpop.f32.mrb[35].mxu1  ;;  %817 = sbr.rel (!%p1738_p4) target bundleno = 800 (0x320), region = 52 }
 0x2de   : > { %809 = vst [vmem:[%s2059_s22 + $0x58] sm:$0xff] %v790_v39 }
 0x2df   : > { %v794_v41 = vpop.f32.mrb[36].mxu1 }
 0x2e0   : > { %v795_v42 = vadd.f32 %v1083_v4, %v794_v41  ;;  %v1396_v43 = vpop.f32.mrb[37].mxu1 }
 0x2e2   : > { %810 = vst [vmem:[%s2059_s22 + $0x60] sm:$0xff] %v795_v42 }
 0x2e3   : > { %s2179_s24 = smov (!%p820_p8, %s819_s24), 13 }
 0x2e4   : > { %s1084_s11 = sshll.u32 %s2179_s24, 7 }
 0x2e5   : > { %p1087_p9 = scmp.eq.s32.totalorder %s1084_s11, 0 }
 0x2e6   : > { %1578 = sdivrem.u32 (!%p1087_p9), %s2179_s24, 13 }
 0x2e7   : > { %828 = sbr.rel (%p1087_p9) target bundleno = 800 (0x320), region = 56 }
 0x2ef   : > { %s2087_s9 = spop.drf %1578 }
 0x2f0   : > { %p1088_p10 = scmp.le.s32.totalorder %s2087_s9, 0 }
 0x2f1   : > { %s2172_s27 = smov (!%p1088_p10), %s2081_s30  ;;  %s2173_s29 = smov (!%p1088_p10), %s2059_s22 }
 0x2f2   : > { %1032 = sbr.rel (%p1088_p10) target bundleno = 771 (0x303), region = 132  ;;  %s2096_s12 = smov (!%p1088_p10), 0  }
 0x2f3   : > { %s2098_s13 = smov (!%p1088_p10), 0  }
 0x2f9 LB: >> { %v916_v44 = vld [vmem:[%s1644_s29] sm:$0xff]  ;;  %v918_v45 = vld [vmem:[%s1644_s29 + $0x8] sm:$0xff]  ;;  %v920_v46 = vld [vmem:[%s1644_s29 + $0x10] sm:$0xff]  ;;  %s942_s14 = sadd.s32 1, %s1648_s12  ;;  %s910_s13 = sadd.s32 1, %s1652_s13   ;;  %s1652_s13 = sphi %s2098_s13, %s910_s13   ;;  %s1648_s12 = sphi %s2096_s12, %s2174_s12   ;;  %s1644_s29 = sphi %s2173_s29, %s947_s29   ;;  %s1640_s27 = sphi %s2172_s27, %s948_s27  }
 0x2fa   : >> { %917 = vst [vmem:[%s1640_s27] sm:$0xff] %v916_v44  ;;  %919 = vst [vmem:[%s1640_s27 + $0x8] sm:$0xff] %v918_v45  ;;  %v922_v47 = vld [vmem:[%s1644_s29 + $0x18] sm:$0xff]  ;;  %v924_v48 = vld [vmem:[%s1644_s29 + $0x20] sm:$0xff]  ;;  %p943_p11 = scmp.ge.s32.totalorder %s942_s14, %s2087_s9  ;;  %p909_p12 = scmp.ge.s32.totalorder %s910_s13, %s2087_s9 }
 0x2fb   : >> { %921 = vst [vmem:[%s1640_s27 + $0x10] sm:$0xff] %v920_v46  ;;  %v926_v49 = vld [vmem:[%s1644_s29 + $0x28] sm:$0xff]  ;;  %923 = vst [vmem:[%s1640_s27 + $0x18] sm:$0xff] %v922_v47  ;;  %v928_v50 = vld [vmem:[%s1644_s29 + $0x30] sm:$0xff] }
 0x2fc   : >> { %925 = vst [vmem:[%s1640_s27 + $0x20] sm:$0xff] %v924_v48  ;;  %927 = vst [vmem:[%s1640_s27 + $0x28] sm:$0xff] %v926_v49  ;;  %v930_v51 = vld [vmem:[%s1644_s29 + $0x38] sm:$0xff]  ;;  %v932_v52 = vld [vmem:[%s1644_s29 + $0x40] sm:$0xff]  ;;  %s2181_s14 = smov (%p943_p11, %s942_s14), 0  ;;  %912 = sbr.rel (!%p909_p12) target bundleno = 761 (0x2f9), region = 138 }
 0x2fd   : >> { %929 = vst [vmem:[%s1640_s27 + $0x30] sm:$0xff] %v928_v50  ;;  %931 = vst [vmem:[%s1640_s27 + $0x38] sm:$0xff] %v930_v51  ;;  %v934_v53 = vld [vmem:[%s1644_s29 + $0x48] sm:$0xff]  ;;  %v936_v54 = vld [vmem:[%s1644_s29 + $0x50] sm:$0xff]  ;;  %s945_s15 = smul.u32 104, %s2181_s14  ;;  %s2174_s12 = smov %s2181_s14 }
 0x2fe   : >> { %933 = vst [vmem:[%s1640_s27 + $0x40] sm:$0xff] %v932_v52  ;;  %v938_v55 = vld [vmem:[%s1644_s29 + $0x58] sm:$0xff]  ;;  %935 = vst [vmem:[%s1640_s27 + $0x48] sm:$0xff] %v934_v53  ;;  %v940_v56 = vld [vmem:[%s1644_s29 + $0x60] sm:$0xff] }
 0x2ff   : >> { %937 = vst [vmem:[%s1640_s27 + $0x50] sm:$0xff] %v936_v54  ;;  %939 = vst [vmem:[%s1640_s27 + $0x58] sm:$0xff] %v938_v55  ;;  %s947_s29 = scalar_lea.vmem %s2059_s22, %s945_s15 [#allocation2]  }
 0x300   : >> { %941 = vst [vmem:[%s1640_s27 + $0x60] sm:$0xff] %v940_v56  ;;  %s948_s27 = scalar_lea.vmem %s2081_s30, %s945_s15  }
 0x303 PF: > { %1580 = sdivrem.u32 %s2179_s24, 13 }
 0x304   : > { %s1089_s16 = smul.u32 104, %s2087_s9 }
 0x306   : > { %s953_s17 = scalar_lea.vmem %s2059_s22, %s1089_s16 [#allocation2]   ;;  %s955_s18 = scalar_lea.vmem %s2081_s30, %s1089_s16  }
 0x30c   : > { %s1581_s19 = spop.drf %1580 }
 0x30d   : > { %p1091_p13 = scmp.le.s32.totalorder %s1581_s19, 0 }
 0x30e   : > { %s1654_s20 = smov (!%p1091_p13), %s955_s18   ;;  %s1658_s21 = smov (!%p1091_p13), %s953_s17  }
 0x30f   : > { %1046 = sbr.rel (%p1091_p13) target bundleno = 800 (0x320), region = 143  ;;  %s1662_s23 = smov (!%p1091_p13), 0  }
 0x310   : > { %s1666_s26 = smov (!%p1091_p13), 0  }
 0x316 LB: >> { %v965_v57 = vld [vmem:[%s1660_s21] sm:$0xff]  ;;  %s967_s10 = sadd.s32 1, %s1664_s23  ;;  %s959_s26 = sadd.s32 1, %s1668_s26   ;;  %s1668_s26 = sphi %s1666_s26, %s959_s26   ;;  %s1664_s23 = sphi %s1662_s23, %s1663_s23   ;;  %s1660_s21 = sphi %s1658_s21, %s972_s21   ;;  %s1656_s20 = sphi %s1654_s20, %s973_s20  }
 0x317   : >> { %966 = vst [vmem:[%s1656_s20] sm:$0xff] %v965_v57  ;;  %p968_p0 = scmp.ge.s32.totalorder %s967_s10, %s1581_s19  ;;  %p958_p1 = scmp.ge.s32.totalorder %s959_s26, %s1581_s19 }
 0x319   : >> { %s2183_s10 = smov (%p968_p0, %s967_s10), 0  ;;  %961 = sbr.rel (!%p958_p1) target bundleno = 790 (0x316), region = 149 }
 0x31a   : >> { %s1092_s22 = sshll.u32 %s2183_s10, 3  ;;  %s1663_s23 = smov %s2183_s10  }
 0x31b   : >> { %s972_s21 = scalar_lea.vmem %s953_s17, %s1092_s22 [#allocation2]   ;;  %s973_s20 = scalar_lea.vmem %s955_s18, %s1092_s22  }
 0x320 PF: > { %p14_p2 = scmp.ge.s32.totalorder %s1728_s28, 4   ;;  %s2175_s24 = smov %s1632_s25 }
 0x321   : > { %s2176_s25 = smov %s1736_s8  ;;  %s2177_s26 = smov %s1728_s28 }
 0x322   :  { %16 = sbr.rel (!%p14_p2) target bundleno = 2 (0x2), region = 160 }

</bundles_post_ra>
